<compile_context>
chip_gen: v5e
topology: v5e:2x2
jax: 0.10.0
libtpu: 0.0.40
codegen_flags: <defaults>
</compile_context>

<pallas_src>
import jax
import jax.numpy as jnp
from jax.experimental import pallas as pl
from jax.experimental.pallas import tpu as pltpu

LANES = 128


def _make_qerror_kernel(rows_valid, tile_rows, chunks_per_split, needs_mask):
    """Build the kernel closure over static tiling parameters."""

    def kernel(x_ref, t_ref, out_ref):
        c = pl.program_id(0)   # split ("parallel" axis, one per TensorCore on v7x)
        i = pl.program_id(1)   # row-tile within the split ("arbitrary" reduction axis)

        # out_ref block index depends only on c -> it stays resident in VMEM
        # across the whole inner axis and acts as this split's accumulator.
        @pl.when(i == 0)
        def _():
            out_ref[...] = jnp.zeros_like(out_ref)

        x = x_ref[...].astype(jnp.float32)
        t = t_ref[...].astype(jnp.float32)

        # Exact PyTorch semantics: two divides (EUP + a few VPU NR steps each);
        # still far below the HBM roofline on v5e/v6e/v7x.
        q = jnp.maximum(x / t, t / x)

        if needs_mask:
            # Boundary / duplicated-clamped blocks: rows at or beyond the real
            # array hold unspecified data. Select (NOT multiply) them to 0 so
            # any NaN/Inf from the garbage divides is discarded.
            row0 = (c * chunks_per_split + i) * tile_rows
            row = row0 + jax.lax.broadcasted_iota(jnp.int32, q.shape, 0)
            q = jnp.where(row < rows_valid, q, 0.0)

        # Fold the (tile_rows, 128) tile onto the (8, 128) vreg-shaped partial:
        # pure VPU adds, no cross-lane (XLU) traffic in the hot loop.
        out_ref[0] += q.reshape(tile_rows // 8, 8, LANES).sum(axis=0)

    return kernel


def q_error_loss(inp, tgt, *, tile_rows=4096):
    """sum(max(input/target, target/input)) as a streaming Pallas reduction.

    Inputs may be any shape/dtype (bf16 inputs halve HBM traffic; the kernel
    upcasts to f32 in VMEM). tile_rows=8192 is a reasonable bump on v7x.
    """
    assert inp.shape == tgt.shape, "input/target must have the same shape"
    n = int(inp.size)
    if n == 0:
        return jnp.float32(0.0)

    x = inp.reshape(-1)
    t = tgt.reshape(-1)

    rows = n // LANES          # 128-aligned bulk rows handled by the kernel
    n_tail = n - rows * LANES  # <=127 trailing elements handled outside

    total = jnp.float32(0.0)

    if rows > 0:
        if n_tail == 0:
            # Pure bitcast reshape, no copies.
            xb = x.reshape(rows, LANES)
            tb = t.reshape(rows, LANES)
        else:
            # Prefix slice of the bulk (no jnp.pad of the full array anymore).
            # TODO(synk): a flat 1-D BlockSpec with an in-kernel element mask
            # would avoid even this prefix-slice copy for ragged sizes.
            xb = x[: rows * LANES].reshape(rows, LANES)
            tb = t[: rows * LANES].reshape(rows, LANES)

        # Tile rows: large by default, multiple of 8 (16-friendly for bf16),
        # never (much) beyond the array.
        tr = min(int(tile_rows), ((rows + 7) // 8) * 8)
        tr = max(8, (tr // 8) * 8)

        chunks = -(-rows // tr)                    # total row tiles
        num_splits = 2 if chunks >= 2 else 1       # 2 TCs on v7x; harmless elsewhere
        cps = -(-chunks // num_splits)             # row tiles per split
        needs_mask = (num_splits * cps * tr) != rows

        kernel = _make_qerror_kernel(rows, tr, cps, needs_mask)

        def in_map(c, i):
            # Clamp so a (possibly) over-covered last split never issues an
            # out-of-bounds DMA; the kernel's row mask zeroes the duplicate.
            return (jnp.minimum(c * cps + i, chunks - 1), 0)

        partials = pl.pallas_call(
            kernel,
            out_shape=jax.ShapeDtypeStruct((num_splits, 8, LANES), jnp.float32),
            grid_spec=pltpu.PrefetchScalarGridSpec(
                num_scalar_prefetch=0,
                grid=(num_splits, cps),
                in_specs=[
                    pl.BlockSpec((tr, LANES), in_map),
                    pl.BlockSpec((tr, LANES), in_map),
                ],
                out_specs=pl.BlockSpec((1, 8, LANES), lambda c, i: (c, 0, 0)),
            ),
            compiler_params=pltpu.CompilerParams(
                dimension_semantics=("parallel", "arbitrary"),
                # 4096x128 f32 x 2 inputs x 2 buffers = 8 MiB + temporaries;
                # raise above v5e's 16 MiB default scoped limit for headroom.
                vmem_limit_bytes=32 * 1024 * 1024,
            ),
        )(xb, tb)

        # Tiny final reduce (<= 2*8*128 f32) over the per-split partials.
        total = total + jnp.sum(partials)

    if n_tail:
        xt = x[rows * LANES :].astype(jnp.float32)
        tt = t[rows * LANES :].astype(jnp.float32)
        total = total + jnp.sum(jnp.maximum(xt / tt, tt / xt))

    return total


if __name__ == "__main__":
    key = jax.random.PRNGKey(0)
    k1, k2, k3, k4, k5, k6 = jax.random.split(key, 6)

    def ref_loss(a, b):
        return jnp.sum(jnp.maximum(a / b, b / a))

    # Elementwise loss over e.g. predicted / true quantities:
    # (batch=2, channels=4, spatial=16x16), strictly positive values.
    shape = (2, 4, 16, 16)
    x = jax.random.uniform(k1, shape, jnp.float32, minval=0.5, maxval=4.0)
    t = jax.random.uniform(k2, shape, jnp.float32, minval=0.5, maxval=4.0)
    out = jax.block_until_ready(q_error_loss(x, t))
    ref = ref_loss(x, t)
    assert jnp.allclose(out, ref, rtol=1e-5, atol=1e-2), (out, ref)

    # Ragged numel (not a multiple of 128): bulk kernel + tiny host-side tail.
    shape2 = (3, 5, 17)
    x2 = jax.random.uniform(k3, shape2, jnp.float32, minval=0.5, maxval=4.0)
    t2 = jax.random.uniform(k4, shape2, jnp.float32, minval=0.5, maxval=4.0)
    out2 = jax.block_until_ready(q_error_loss(x2, t2))
    ref2 = ref_loss(x2, t2)
    assert jnp.allclose(out2, ref2, rtol=1e-5, atol=1e-2), (out2, ref2)

    # Multi-tile + dual-split path (small tile_rows to force several grid
    # steps), including an odd chunk count that exercises the clamped index_map.
    shape3 = (64, 1024)
    x3 = jax.random.uniform(k5, shape3, jnp.float32, minval=0.5, maxval=4.0)
    t3 = jax.random.uniform(k6, shape3, jnp.float32, minval=0.5, maxval=4.0)
    ref3 = ref_loss(x3, t3)
    for tr in (64, 104):
        out3 = jax.block_until_ready(q_error_loss(x3, t3, tile_rows=tr))
        assert jnp.allclose(out3, ref3, rtol=1e-5, atol=1e-1), (tr, out3, ref3)

    print("KERNEL_OK")
</pallas_src>

<mosaic_0001>
module attributes {stable_mosaic.version = 11 : i64} {
  func.func @kernel(%arg0: i32, %arg1: i32, %arg2: memref<16x128xf32, #tpu.memory_space<vmem>>, %arg3: memref<16x128xf32, #tpu.memory_space<vmem>>, %arg4: memref<1x8x128xf32, #tpu.memory_space<vmem>>) attributes {dimension_semantics = [#tpu.dimension_semantics<parallel>, #tpu.dimension_semantics<arbitrary>], iteration_bounds = array<i64: 1, 1>, scalar_prefetch = 0 : i64, scratch_operands = 0 : i64, tpu.core_type = #tpu.core_type<tc>, window_params = [{transform_indices = @transform_0, window_bounds = array<i64: 16, 128>}, {transform_indices = @transform_1, window_bounds = array<i64: 16, 128>}, {transform_indices = @transform_2, window_bounds = array<i64: 1, 8, 128>}]} {
    %c0_i32 = arith.constant 0 : i32
    %0 = arith.cmpi eq, %arg1, %c0_i32 : i32
    %1 = arith.extui %0 : i1 to i32
    %c0_i32_0 = arith.constant 0 : i32
    %2 = arith.cmpi ne, %1, %c0_i32_0 : i32
    scf.if %2 {
      %cst_10 = arith.constant 0.000000e+00 : f32
      %16 = vector.broadcast %cst_10 : f32 to vector<1x8x128xf32>
      %c0_11 = arith.constant 0 : index
      %c0_12 = arith.constant 0 : index
      %c0_13 = arith.constant 0 : index
      %17 = vector.load %arg4[%c0_11, %c0_12, %c0_13] : memref<1x8x128xf32, #tpu.memory_space<vmem>>, vector<1x8x128xf32>
      tpu.vector_store %arg4[%c0_11, %c0_12, %c0_13], %16 {strides = array<i32>} : memref<1x8x128xf32, #tpu.memory_space<vmem>>, vector<1x8x128xf32>,
    } else {
    }
    %c0 = arith.constant 0 : index
    %c0_1 = arith.constant 0 : index
    %3 = vector.load %arg2[%c0, %c0_1] : memref<16x128xf32, #tpu.memory_space<vmem>>, vector<16x128xf32>
    %c0_2 = arith.constant 0 : index
    %c0_3 = arith.constant 0 : index
    %4 = vector.load %arg3[%c0_2, %c0_3] : memref<16x128xf32, #tpu.memory_space<vmem>>, vector<16x128xf32>
    %5 = arith.divf %3, %4 : vector<16x128xf32>
    %6 = arith.divf %4, %3 : vector<16x128xf32>
    %7 = arith.maximumf %5, %6 : vector<16x128xf32>
    %c0_4 = arith.constant 0 : index
    %c0_5 = arith.constant 0 : index
    %c0_6 = arith.constant 0 : index
    %8 = vector.load %arg4[%c0_4, %c0_5, %c0_6] : memref<1x8x128xf32, #tpu.memory_space<vmem>>, vector<1x8x128xf32>
    %9 = vector.shape_cast %8 : vector<1x8x128xf32> to vector<8x128xf32>
    %10 = vector.shape_cast %7 : vector<16x128xf32> to vector<2x8x128xf32>
    %cst = arith.constant dense<0.000000e+00> : vector<8x128xf32>
    %11 = vector.multi_reduction <add>, %10, %cst [0] : vector<2x8x128xf32> to vector<8x128xf32>
    %12 = arith.addf %9, %11 : vector<8x128xf32>
    %c0_7 = arith.constant 0 : index
    %c0_8 = arith.constant 0 : index
    %c0_9 = arith.constant 0 : index
    %13 = vector.load %arg4[%c0_7, %c0_8, %c0_9] : memref<1x8x128xf32, #tpu.memory_space<vmem>>, vector<1x8x128xf32>
    %14 = vector.shape_cast %13 : vector<1x8x128xf32> to vector<8x128xf32>
    %15 = vector.shape_cast %12 : vector<8x128xf32> to vector<1x8x128xf32>
    tpu.vector_store %arg4[%c0_7, %c0_8, %c0_9], %15 {strides = array<i32>} : memref<1x8x128xf32, #tpu.memory_space<vmem>>, vector<1x8x128xf32>,
    return
  }
  func.func @transform_0(%arg0: i32, %arg1: i32) -> (i32, i32) {
    %c1_i32 = arith.constant 1 : i32
    %0 = arith.muli %arg0, %c1_i32 : i32
    %1 = arith.addi %0, %arg1 : i32
    %c0_i32 = arith.constant 0 : i32
    %2 = arith.minsi %1, %c0_i32 : i32
    %c0_i32_0 = arith.constant 0 : i32
    %c0_i32_1 = arith.constant 0 : i32
    return %2, %c0_i32_0 : i32, i32
  }
  func.func @transform_1(%arg0: i32, %arg1: i32) -> (i32, i32) {
    %c1_i32 = arith.constant 1 : i32
    %0 = arith.muli %arg0, %c1_i32 : i32
    %1 = arith.addi %0, %arg1 : i32
    %c0_i32 = arith.constant 0 : i32
    %2 = arith.minsi %1, %c0_i32 : i32
    %c0_i32_0 = arith.constant 0 : i32
    %c0_i32_1 = arith.constant 0 : i32
    return %2, %c0_i32_0 : i32, i32
  }
  func.func @transform_2(%arg0: i32, %arg1: i32) -> (i32, i32, i32) {
    %c0_i32 = arith.constant 0 : i32
    %c0_i32_0 = arith.constant 0 : i32
    %c0_i32_1 = arith.constant 0 : i32
    return %arg0, %c0_i32, %c0_i32_0 : i32, i32, i32
  }
}

</mosaic_0001>

<bundles_post_ra>
// kernel: tpu_custom_call.1
= control target key start
LH: loop header
LB: loop body
LE: loop exit
PB: predicated region body
PF: predicated region fallthrough
CT: control target
= control target key end

     0   :  { %7 = vsyncpa [#allocation3], 0  ;;  %s328_s0 = inlined_call_operand.hbm [shape: f32[16,128], index: 0, kind: input, shape index: {}]   ;;  %s329_s1 = inlined_call_operand.hbm [shape: f32[16,128], index: 1, kind: input, shape index: {}]   ;;  %s330_s2 = inlined_call_operand.hbm [shape: f32[1,8,128], index: 2, kind: output, shape index: {}]  }
   0x1   :  { %8 = vsyncpa [#allocation6], 0 }
   0x2   :  { %9 = vsyncpa [#allocation4], 0  ;;  %s20_s11 = sshll.u32 %s328_s0, 4  ;;  %s253_s12 = smov [#allocation2]   ;;  %s21_s11 = int_to_ptr.hbm [resolvable:$true] %s20_s11 }
   0x3   :  { %s22_s13 = sshll.u32 %s253_s12, 4  ;;  %s39_s16 = sshll.u32 %s329_s1, 4  ;;  %s23_s13 = int_to_ptr.vmem [resolvable:$true] %s22_s13  ;;  %s40_s16 = int_to_ptr.hbm [resolvable:$true] %s39_s16 }
   0x4   :  { %s254_s17 = smov 128   ;;  %s255_s18 = smov 8  }
   0x5   :  { %28 = dma.hbm_to_vmem [thread:$0]  %s21_s11, 256, %s23_s13, [#allocation3], %s254_s17, %s254_s17, %s255_s18  }
   0x6   :  { %s256_s19 = smov [#allocation5]  }
   0x7   :  { %s41_s20 = sshll.u32 %s256_s19, 4  ;;  %s42_s20 = int_to_ptr.vmem [resolvable:$true] %s41_s20 }
   0x8   :  { %47 = dma.hbm_to_vmem [thread:$0]  %s40_s16, 256, %s42_s20, [#allocation6], %s254_s17, %s254_s17, %s255_s18  }
   0x9   :  { %247 = dma.done.wait [#allocation3], 256  }
   0xa   :  { %248 = vsyncadd [#allocation3], 4294967040 }
   0xb   :  { %249 = dma.done.wait [#allocation6], 256  }
   0xc   :  { %250 = vsyncadd [#allocation6], 4294967040  ;;  %v69_v0 = vld [vmem:[#allocation2] sm:$0xff]  ;;  %v279_v1 = vld [vmem:[#allocation5] sm:$0xff]  ;;  %s257_s0 = smov [#allocation7]   ;;  %s146_s23 = sshll.u32 %s330_s2, 4  ;;  %s147_s23 = int_to_ptr.hbm [resolvable:$true] %s146_s23 }
   0xd   :  { %v281_v2 = vld [vmem:[#allocation5 + $0x8] sm:$0xff]  ;;  %167 = vrcp.f32 %v279_v1  ;;  %v70_v3 = vld [vmem:[#allocation2 + $0x8] sm:$0xff]  ;;  %v82_v4 = vand.u32 2147483647, %v279_v1  ;;  %v84_v5 = vand.u32 2147483648, %v279_v1  ;;  %vm78_vm0 = vweird.f32 %v279_v1  ;;  %s144_s1 = sshll.u32 %s257_s0, 4  ;;  %s145_s1 = int_to_ptr.vmem [resolvable:$true] %s144_s1 }
   0xe   :  { %169 = vrcp.f32 %v281_v2  ;;  %v99_v6 = vand.u32 2147483648, %v281_v2  ;;  %vm93_vm1 = vweird.f32 %v281_v2  ;;  %v97_v10 = vand.u32 2147483647, %v281_v2 }
   0xf   :  { %171 = vrcp.f32 %v69_v0  ;;  %vm292_vm2 = vcmp.eq.f32.partialorder %v82_v4, 8.507059e+37  ;;  %v85_v13 = vor.u32 1.1754944e-38, %v84_v5  ;;  %vm108_vm3 = vweird.f32 %v69_v0 }
  0x10   :  { %173 = vrcp.f32 %v70_v3  ;;  %v100_v16 = vor.u32 1.1754944e-38, %v99_v6  ;;  %v112_v20 = vand.u32 2147483647, %v69_v0  ;;  %v114_v21 = vand.u32 2147483648, %v69_v0 }
  0x11   :  { %vm123_vm8 = vweird.f32 %v70_v3  ;;  %v127_v27 = vand.u32 2147483647, %v70_v3  ;;  %v129_v28 = vand.u32 2147483648, %v70_v3  ;;  %vm98_vm11 = vcmp.eq.f32.partialorder %v97_v10, 8.507059e+37 }
  0x12   :  { %v115_v35 = vor.u32 1.1754944e-38, %v114_v21  ;;  %vm113_vm13 = vcmp.eq.f32.partialorder %v112_v20, 8.507059e+37 }
  0x13   :  { %v168_v7 = vpop.eup %167  ;;  %vm128_vm15 = vcmp.eq.f32.partialorder %v127_v27, 8.507059e+37  ;;  %v130_v41 = vor.u32 1.1754944e-38, %v129_v28 }
  0x14   :  { %v170_v8 = vpop.eup %169  ;;  %v74_v9 = vmul.f32 %v168_v7, %v279_v1  ;;  %vm79_vm4 = vweird.f32 %v168_v7 }
  0x15   :  { %v172_v11 = vpop.eup %171  ;;  %v89_v14 = vmul.f32 %v170_v8, %v281_v2  ;;  %vm94_vm5 = vweird.f32 %v170_v8  ;;  %vm299_vm7 = vmor %vm78_vm0, %vm79_vm4 }
  0x16   :  { %v75_v15 = vsub.f32 1.0, %v74_v9  ;;  %v104_v17 = vmul.f32 %v172_v11, %v69_v0  ;;  %v174_v18 = vpop.eup %173  ;;  %vm109_vm6 = vweird.f32 %v172_v11  ;;  %vm305_vm9 = vmor %vm93_vm1, %vm94_vm5 }
  0x17   :  { %v90_v19 = vsub.f32 1.0, %v89_v14  ;;  %v119_v24 = vmul.f32 %v174_v18, %v70_v3  ;;  %vm124_vm10 = vweird.f32 %v174_v18  ;;  %vm310_vm12 = vmor %vm108_vm3, %vm109_vm6 }
  0x18   :  { %v76_v22 = vmul.f32 %v168_v7, %v75_v15  ;;  %v105_v23 = vsub.f32 1.0, %v104_v17  ;;  %vm125_vm14 = vmor %vm123_vm8, %vm124_vm10 }
  0x19   :  { %v91_v26 = vmul.f32 %v170_v8, %v90_v19  ;;  %v120_v32 = vsub.f32 1.0, %v119_v24 }
  0x1a   :  { %v77_v29 = vadd.f32 %v168_v7, %v76_v22  ;;  %v106_v31 = vmul.f32 %v172_v11, %v105_v23 }
  0x1b   :  { %v92_v33 = vadd.f32 %v170_v8, %v91_v26  ;;  %v121_v38 = vmul.f32 %v174_v18, %v120_v32 }
  0x1c   :  { %v81_v36 = vsel %vm299_vm7, %v168_v7, %v77_v29  ;;  %v107_v37 = vadd.f32 %v172_v11, %v106_v31 }
  0x1d   :  { %v86_v39 = vsel %vm292_vm2, %v85_v13, %v81_v36  ;;  %v96_v40 = vsel %vm305_vm9, %v170_v8, %v92_v33  ;;  %v122_v45 = vadd.f32 %v174_v18, %v121_v38 }
  0x1e   :  { %v87_v42 = vmul.f32 %v86_v39, %v69_v0  ;;  %v101_v43 = vsel %vm98_vm11, %v100_v16, %v96_v40  ;;  %v111_v44 = vsel %vm310_vm12, %v172_v11, %v107_v37 }
  0x1f   :  { %v116_v46 = vsel %vm113_vm13, %v115_v35, %v111_v44  ;;  %v102_v47 = vmul.f32 %v101_v43, %v70_v3  ;;  %v126_v49 = vsel %vm125_vm14, %v174_v18, %v122_v45 }
  0x20   :  { %v117_v48 = vmul.f32 %v116_v46, %v279_v1  ;;  %v131_v50 = vsel %vm128_vm15, %v130_v41, %v126_v49 }
  0x21   :  { %v132_v51 = vmul.f32 %v131_v50, %v281_v2 }
  0x22   :  { %v133_v52 = vmax.f32 %v87_v42, %v117_v48 }
  0x23   :  { %v134_v53 = vmax.f32 %v102_v47, %v132_v51 }
  0x25   :  { %v136_v54 = vadd.f32 %v134_v53, %v133_v52 }
  0x27   :  { %138 = vst [vmem:[#allocation7] sm:$0xff] %v136_v54 }
  0x28   :  { %149 = dma.vmem_to_hbm [thread:$0]  %s145_s1, 128, %s147_s23, [#allocation4]  }
  0x29   :  { %251 = dma.done.wait [#allocation4], 128  }
  0x2a   :  { %252 = vsyncadd [#allocation4], 4294967168 }
  0x2b   :  { %154 = vsyncpa [#allocation3], 1 }
  0x2c   :  { %155 = vsyncpa [#allocation6], 1 }
  0x2d   :  { %156 = vsyncpa [#allocation4], 1 }

</bundles_post_ra>
